<compile_context>
chip_gen: v5e
topology: v5e:2x2
jax: 0.10.0
libtpu: 0.0.40
codegen_flags: <defaults>
</compile_context>

<pallas_src>
import functools
import math

import jax
import jax.numpy as jnp
from jax import lax
from jax.experimental import pallas as pl
from jax.experimental.pallas import tpu as pltpu


# ----------------------------- Pallas kernel ------------------------------- #

def _residual_mha_kernel(x_ref, w_ref, ln_ref, o_ref, a_ref, *, num_heads, scale):
    """Per-batch fused ResiDual_MHA forward.

    x_ref : (S, H)        input tile (lane-dense)
    w_ref : (H, 3H)       fused [Wq | Wk | Wv] weight (resident)
    ln_ref: (6, H)        [g_start, b_start, g_left, b_left, g_right, b_right]
    o_ref : (S, H)        output tile (lane-dense)
    a_ref : (nH, S, S)    attention maps for this batch element
    """
    S, H = x_ref.shape
    d = H // num_heads
    eps = 1e-5

    x = x_ref[...].astype(jnp.float32)          # (S, H)
    ln = ln_ref[...].astype(jnp.float32)        # (6, H)

    def layer_norm(v, g_row, b_row):
        mu = jnp.mean(v, axis=-1, keepdims=True)
        c = v - mu
        var = jnp.mean(c * c, axis=-1, keepdims=True)
        return c * lax.rsqrt(var + eps) * g_row + b_row

    g0, b0 = ln[0:1, :], ln[1:2, :]
    g1, b1 = ln[2:3, :], ln[3:4, :]
    g2, b2 = ln[4:5, :], ln[5:6, :]

    id_ln = layer_norm(x, g0, b0)               # (S, H)

    # Fused Q/K/V projection (bias=False): (S, H) @ (H, 3H) -> (S, 3H)
    qkv = jnp.dot(id_ln, w_ref[...], preferred_element_type=jnp.float32)

    ctx_heads = []
    for h in range(num_heads):                  # num_heads is static -> unrolled
        qh = qkv[:, h * d:(h + 1) * d] * scale          # fold 1/sqrt(d) into Q
        kh = qkv[:, H + h * d:H + (h + 1) * d]
        vh = qkv[:, 2 * H + h * d:2 * H + (h + 1) * d]

        # scores: contract last dims directly (no explicit transpose of K)
        raw = lax.dot_general(
            qh, kh, dimension_numbers=(((1,), (1,)), ((), ())),
            preferred_element_type=jnp.float32)          # (S, S)

        m = jnp.max(raw, axis=-1, keepdims=True)
        e = jnp.exp(raw - m)
        p = e * pl.reciprocal(jnp.sum(e, axis=-1, keepdims=True), approx=True)

        a_ref[h] = p.astype(a_ref.dtype)
        ctx_heads.append(jnp.dot(p, vh, preferred_element_type=jnp.float32))

    # merge heads back along features (same order as torch.cat(split(batch, 0), 2))
    O_ = jnp.concatenate(ctx_heads, axis=-1)    # (S, H), lane-dense

    left = layer_norm(id_ln + O_, g1, b1)       # ln_add_left(id_ln + O_)
    right = layer_norm(x + O_, g2, b2)          # ln_add_right(residual + O_)
    o_ref[...] = (left + right).astype(o_ref.dtype)


# ----------------------------- wrapper -------------------------------------- #

def residual_mha_forward(params, id_x, *, num_heads, mask=None):
    """id_x: (B, S, H) -> (out: (B, S, H), A: (num_heads*B, S, S))."""
    assert mask is None  # TODO(synk): mask path not implemented
    B, S, H = id_x.shape
    d = H // num_heads
    scale = 1.0 / math.sqrt(d)

    # Fuse [Wq | Wk | Wv] into one (H, 3H) weight (weights stored PyTorch-style: (out, in)).
    w_qkv = jnp.concatenate(
        [params["wq"].T, params["wk"].T, params["wv"].T], axis=1)            # (H, 3H)
    ln_params = jnp.stack(
        [params["ln0_g"], params["ln0_b"],
         params["ln1_g"], params["ln1_b"],
         params["ln2_g"], params["ln2_b"]], axis=0)                          # (6, H)

    kernel = functools.partial(_residual_mha_kernel, num_heads=num_heads, scale=scale)

    out, attn = pl.pallas_call(
        kernel,
        out_shape=(
            jax.ShapeDtypeStruct((B, S, H), id_x.dtype),
            jax.ShapeDtypeStruct((num_heads, B, S, S), jnp.float32),
        ),
        grid=(B,),
        in_specs=[
            pl.BlockSpec((None, S, H), lambda b: (b, 0, 0)),     # per-batch input tile
            pl.BlockSpec((H, 3 * H), lambda b: (0, 0)),          # resident fused weights
            pl.BlockSpec((6, H), lambda b: (0, 0)),              # resident LN params
        ],
        out_specs=(
            pl.BlockSpec((None, S, H), lambda b: (b, 0, 0)),
            pl.BlockSpec((num_heads, None, S, S), lambda b: (0, b, 0, 0)),
        ),
        compiler_params=pltpu.CompilerParams(dimension_semantics=("parallel",)),
    )(id_x, w_qkv, ln_params)

    # torch.cat(Q.split(d, 2), 0) ordering: A[h*B + b] == attn[h, b]
    A = attn.reshape(num_heads * B, S, S)
    return out, A


# ----------------------------- pure-JAX reference --------------------------- #

def reference_forward(params, id_x, *, num_heads):
    B, S, H = id_x.shape
    d = H // num_heads
    eps = 1e-5

    def ln(v, g, b):
        mu = v.mean(-1, keepdims=True)
        var = ((v - mu) ** 2).mean(-1, keepdims=True)
        return (v - mu) / jnp.sqrt(var + eps) * g + b

    id_ln = ln(id_x, params["ln0_g"], params["ln0_b"])
    Q = id_ln @ params["wq"].T
    K = id_ln @ params["wk"].T
    V = id_ln @ params["wv"].T

    def split_heads(t):   # torch.cat(t.split(d, 2), 0) -> (nH*B, S, d), head-major
        return jnp.concatenate(jnp.split(t, num_heads, axis=2), axis=0)

    Q_, K_, V_ = split_heads(Q), split_heads(K), split_heads(V)
    raw = jnp.einsum("bqd,bkd->bqk", Q_, K_) / math.sqrt(d)
    A = jax.nn.softmax(raw, axis=-1)
    O_ = jnp.einsum("bqk,bkd->bqd", A, V_)
    O_ = jnp.concatenate(jnp.split(O_, num_heads, axis=0), axis=2)   # (B, S, H)

    left = ln(id_ln + O_, params["ln1_g"], params["ln1_b"])
    right = ln(id_x + O_, params["ln2_g"], params["ln2_b"])
    return left + right, A


# ----------------------------- init & main ---------------------------------- #

def init_params(key, dim_H):
    def init_linear(k, fan_in, fan_out):
        bound = 1.0 / math.sqrt(fan_in)
        return jax.random.uniform(k, (fan_out, fan_in), jnp.float32, -bound, bound)

    keys = jax.random.split(key, 9)
    params = {
        "wq": init_linear(keys[0], dim_H, dim_H),
        "wk": init_linear(keys[1], dim_H, dim_H),
        "wv": init_linear(keys[2], dim_H, dim_H),
        # fc_o exists in the PyTorch module but is never used in forward -> not materialized.
        "ln0_g": 1.0 + 0.1 * jax.random.normal(keys[3], (dim_H,), jnp.float32),
        "ln0_b": 0.1 * jax.random.normal(keys[4], (dim_H,), jnp.float32),
        "ln1_g": 1.0 + 0.1 * jax.random.normal(keys[5], (dim_H,), jnp.float32),
        "ln1_b": 0.1 * jax.random.normal(keys[6], (dim_H,), jnp.float32),
        "ln2_g": 1.0 + 0.1 * jax.random.normal(keys[7], (dim_H,), jnp.float32),
        "ln2_b": 0.1 * jax.random.normal(keys[8], (dim_H,), jnp.float32),
    }
    return params


if __name__ == "__main__":
    B, S, dim_H = 2, 8, 32
    num_heads = 4

    key = jax.random.PRNGKey(0)
    k_x, k_p = jax.random.split(key)
    id_x = jax.random.normal(k_x, (B, S, dim_H), jnp.float32)
    params = init_params(k_p, dim_H)

    out, A = residual_mha_forward(params, id_x, num_heads=num_heads)
    out = jax.block_until_ready(out)
    A = jax.block_until_ready(A)

    ref_out, ref_A = reference_forward(params, id_x, num_heads=num_heads)

    assert out.shape == (B, S, dim_H)
    assert A.shape == (num_heads * B, S, S)
    assert jnp.allclose(out, ref_out, atol=2e-3, rtol=2e-3), \
        float(jnp.max(jnp.abs(out - ref_out)))
    assert jnp.allclose(A, ref_A, atol=2e-3, rtol=2e-3), \
        float(jnp.max(jnp.abs(A - ref_A)))

    print("KERNEL_OK")
</pallas_src>

<mosaic_0001>
module attributes {stable_mosaic.version = 11 : i64} {
  func.func @_residual_mha_kernel(%arg0: i32, %arg1: memref<1x8x32xf32, #tpu.memory_space<vmem>>, %arg2: memref<32x96xf32, #tpu.memory_space<vmem>>, %arg3: memref<6x32xf32, #tpu.memory_space<vmem>>, %arg4: memref<1x8x32xf32, #tpu.memory_space<vmem>>, %arg5: memref<4x1x8x8xf32, #tpu.memory_space<vmem>>) attributes {dimension_semantics = [#tpu.dimension_semantics<parallel>], iteration_bounds = array<i64: 2>, scalar_prefetch = 0 : i64, scratch_operands = 0 : i64, tpu.core_type = #tpu.core_type<tc>, window_params = [{transform_indices = @transform_0, window_bounds = array<i64: 1, 8, 32>}, {pipeline_mode = #tpu.pipeline_mode<synchronous>, transform_indices = @transform_1, window_bounds = array<i64: 32, 96>}, {pipeline_mode = #tpu.pipeline_mode<synchronous>, transform_indices = @transform_2, window_bounds = array<i64: 6, 32>}, {transform_indices = @transform_3, window_bounds = array<i64: 1, 8, 32>}, {transform_indices = @transform_4, window_bounds = array<i64: 4, 1, 8, 8>}]} {
    %c0 = arith.constant 0 : index
    %c0_0 = arith.constant 0 : index
    %c0_1 = arith.constant 0 : index
    %0 = vector.load %arg1[%c0, %c0_0, %c0_1] : memref<1x8x32xf32, #tpu.memory_space<vmem>>, vector<1x8x32xf32>
    %1 = vector.shape_cast %0 : vector<1x8x32xf32> to vector<8x32xf32>
    %c0_2 = arith.constant 0 : index
    %c0_3 = arith.constant 0 : index
    %2 = vector.load %arg3[%c0_2, %c0_3] : memref<6x32xf32, #tpu.memory_space<vmem>>, vector<6x32xf32>
    %3 = vector.extract_strided_slice %2 {offsets = [0, 0], sizes = [1, 32], strides = [1, 1]} : vector<6x32xf32> to vector<1x32xf32>
    %4 = vector.extract_strided_slice %2 {offsets = [1, 0], sizes = [1, 32], strides = [1, 1]} : vector<6x32xf32> to vector<1x32xf32>
    %5 = vector.extract_strided_slice %2 {offsets = [2, 0], sizes = [1, 32], strides = [1, 1]} : vector<6x32xf32> to vector<1x32xf32>
    %6 = vector.extract_strided_slice %2 {offsets = [3, 0], sizes = [1, 32], strides = [1, 1]} : vector<6x32xf32> to vector<1x32xf32>
    %7 = vector.extract_strided_slice %2 {offsets = [4, 0], sizes = [1, 32], strides = [1, 1]} : vector<6x32xf32> to vector<1x32xf32>
    %8 = vector.extract_strided_slice %2 {offsets = [5, 0], sizes = [1, 32], strides = [1, 1]} : vector<6x32xf32> to vector<1x32xf32>
    %cst = arith.constant dense<0.000000e+00> : vector<8xf32>
    %9 = vector.multi_reduction <add>, %1, %cst [1] : vector<8x32xf32> to vector<8xf32>
    %10 = vector.shape_cast %9 : vector<8xf32> to vector<8x1xf32>
    %cst_4 = arith.constant 3.200000e+01 : f32
    %11 = vector.broadcast %cst_4 : f32 to vector<8x1xf32>
    %12 = arith.divf %10, %11 : vector<8x1xf32>
    %13 = vector.broadcast %12 : vector<8x1xf32> to vector<8x32xf32>
    %14 = arith.subf %1, %13 : vector<8x32xf32>
    %15 = arith.mulf %14, %14 : vector<8x32xf32>
    %cst_5 = arith.constant dense<0.000000e+00> : vector<8xf32>
    %16 = vector.multi_reduction <add>, %15, %cst_5 [1] : vector<8x32xf32> to vector<8xf32>
    %17 = vector.shape_cast %16 : vector<8xf32> to vector<8x1xf32>
    %cst_6 = arith.constant 3.200000e+01 : f32
    %18 = vector.broadcast %cst_6 : f32 to vector<8x1xf32>
    %19 = arith.divf %17, %18 : vector<8x1xf32>
    %cst_7 = arith.constant 9.99999974E-6 : f32
    %20 = vector.broadcast %cst_7 : f32 to vector<8x1xf32>
    %21 = arith.addf %19, %20 : vector<8x1xf32>
    %22 = math.rsqrt %21 : vector<8x1xf32>
    %23 = vector.broadcast %22 : vector<8x1xf32> to vector<8x32xf32>
    %24 = arith.mulf %14, %23 : vector<8x32xf32>
    %25 = vector.broadcast %3 : vector<1x32xf32> to vector<8x32xf32>
    %26 = arith.mulf %24, %25 : vector<8x32xf32>
    %27 = vector.broadcast %4 : vector<1x32xf32> to vector<8x32xf32>
    %28 = arith.addf %26, %27 : vector<8x32xf32>
    %c0_8 = arith.constant 0 : index
    %c0_9 = arith.constant 0 : index
    %29 = vector.load %arg2[%c0_8, %c0_9] : memref<32x96xf32, #tpu.memory_space<vmem>>, vector<32x96xf32>
    %cst_10 = arith.constant dense<0.000000e+00> : vector<8x96xf32>
    %30 = tpu.matmul %28, %29, %cst_10 {dimension_numbers = #tpu.dot_dimension_numbers<[1], [0], [0], [1], [0, 0, 1, 1], [], []>} : vector<8x32xf32>, vector<32x96xf32>, vector<8x96xf32> -> vector<8x96xf32>
    %31 = vector.extract_strided_slice %30 {offsets = [0, 0], sizes = [8, 8], strides = [1, 1]} : vector<8x96xf32> to vector<8x8xf32>
    %cst_11 = arith.constant 0.353553385 : f32
    %32 = vector.broadcast %cst_11 : f32 to vector<8x8xf32>
    %33 = arith.mulf %31, %32 : vector<8x8xf32>
    %34 = vector.extract_strided_slice %30 {offsets = [0, 32], sizes = [8, 8], strides = [1, 1]} : vector<8x96xf32> to vector<8x8xf32>
    %35 = vector.extract_strided_slice %30 {offsets = [0, 64], sizes = [8, 8], strides = [1, 1]} : vector<8x96xf32> to vector<8x8xf32>
    %cst_12 = arith.constant dense<0.000000e+00> : vector<8x8xf32>
    %36 = tpu.matmul %33, %34, %cst_12 {dimension_numbers = #tpu.dot_dimension_numbers<[1], [1], [0], [0], [0, 0, 1, 0], [], []>} : vector<8x8xf32>, vector<8x8xf32>, vector<8x8xf32> -> vector<8x8xf32>
    %cst_13 = arith.constant dense<0xFF800000> : vector<8xf32>
    %37 = vector.multi_reduction <maximumf>, %36, %cst_13 [1] : vector<8x8xf32> to vector<8xf32>
    %38 = vector.shape_cast %37 : vector<8xf32> to vector<8x1xf32>
    %39 = vector.broadcast %38 : vector<8x1xf32> to vector<8x8xf32>
    %40 = arith.subf %36, %39 : vector<8x8xf32>
    %41 = math.exp %40 : vector<8x8xf32>
    %cst_14 = arith.constant dense<0.000000e+00> : vector<8xf32>
    %42 = vector.multi_reduction <add>, %41, %cst_14 [1] : vector<8x8xf32> to vector<8xf32>
    %43 = vector.shape_cast %42 : vector<8xf32> to vector<8x1xf32>
    %44 = tpu.reciprocal %43 {approx = true} : vector<8x1xf32> -> vector<8x1xf32>
    %45 = vector.broadcast %44 : vector<8x1xf32> to vector<8x8xf32>
    %46 = arith.mulf %41, %45 : vector<8x8xf32>
    %c0_15 = arith.constant 0 : index
    %c0_16 = arith.constant 0 : index
    %c0_17 = arith.constant 0 : index
    %c0_18 = arith.constant 0 : index
    %47 = vector.load %arg5[%c0_15, %c0_16, %c0_17, %c0_18] : memref<4x1x8x8xf32, #tpu.memory_space<vmem>>, vector<1x1x8x8xf32>
    %48 = vector.shape_cast %47 : vector<1x1x8x8xf32> to vector<8x8xf32>
    %49 = vector.shape_cast %46 : vector<8x8xf32> to vector<1x1x8x8xf32>
    tpu.vector_store %arg5[%c0_15, %c0_16, %c0_17, %c0_18], %49 {strides = array<i32>} : memref<4x1x8x8xf32, #tpu.memory_space<vmem>>, vector<1x1x8x8xf32>,
    %cst_19 = arith.constant dense<0.000000e+00> : vector<8x8xf32>
    %50 = tpu.matmul %46, %35, %cst_19 {dimension_numbers = #tpu.dot_dimension_numbers<[1], [0], [0], [1], [0, 0, 1, 1], [], []>} : vector<8x8xf32>, vector<8x8xf32>, vector<8x8xf32> -> vector<8x8xf32>
    %51 = vector.extract_strided_slice %30 {offsets = [0, 8], sizes = [8, 8], strides = [1, 1]} : vector<8x96xf32> to vector<8x8xf32>
    %cst_20 = arith.constant 0.353553385 : f32
    %52 = vector.broadcast %cst_20 : f32 to vector<8x8xf32>
    %53 = arith.mulf %51, %52 : vector<8x8xf32>
    %54 = vector.extract_strided_slice %30 {offsets = [0, 40], sizes = [8, 8], strides = [1, 1]} : vector<8x96xf32> to vector<8x8xf32>
    %55 = vector.extract_strided_slice %30 {offsets = [0, 72], sizes = [8, 8], strides = [1, 1]} : vector<8x96xf32> to vector<8x8xf32>
    %cst_21 = arith.constant dense<0.000000e+00> : vector<8x8xf32>
    %56 = tpu.matmul %53, %54, %cst_21 {dimension_numbers = #tpu.dot_dimension_numbers<[1], [1], [0], [0], [0, 0, 1, 0], [], []>} : vector<8x8xf32>, vector<8x8xf32>, vector<8x8xf32> -> vector<8x8xf32>
    %cst_22 = arith.constant dense<0xFF800000> : vector<8xf32>
    %57 = vector.multi_reduction <maximumf>, %56, %cst_22 [1] : vector<8x8xf32> to vector<8xf32>
    %58 = vector.shape_cast %57 : vector<8xf32> to vector<8x1xf32>
    %59 = vector.broadcast %58 : vector<8x1xf32> to vector<8x8xf32>
    %60 = arith.subf %56, %59 : vector<8x8xf32>
    %61 = math.exp %60 : vector<8x8xf32>
    %cst_23 = arith.constant dense<0.000000e+00> : vector<8xf32>
    %62 = vector.multi_reduction <add>, %61, %cst_23 [1] : vector<8x8xf32> to vector<8xf32>
    %63 = vector.shape_cast %62 : vector<8xf32> to vector<8x1xf32>
    %64 = tpu.reciprocal %63 {approx = true} : vector<8x1xf32> -> vector<8x1xf32>
    %65 = vector.broadcast %64 : vector<8x1xf32> to vector<8x8xf32>
    %66 = arith.mulf %61, %65 : vector<8x8xf32>
    %c1 = arith.constant 1 : index
    %c0_24 = arith.constant 0 : index
    %c0_25 = arith.constant 0 : index
    %c0_26 = arith.constant 0 : index
    %67 = vector.load %arg5[%c1, %c0_24, %c0_25, %c0_26] : memref<4x1x8x8xf32, #tpu.memory_space<vmem>>, vector<1x1x8x8xf32>
    %68 = vector.shape_cast %67 : vector<1x1x8x8xf32> to vector<8x8xf32>
    %69 = vector.shape_cast %66 : vector<8x8xf32> to vector<1x1x8x8xf32>
    tpu.vector_store %arg5[%c1, %c0_24, %c0_25, %c0_26], %69 {strides = array<i32>} : memref<4x1x8x8xf32, #tpu.memory_space<vmem>>, vector<1x1x8x8xf32>,
    %cst_27 = arith.constant dense<0.000000e+00> : vector<8x8xf32>
    %70 = tpu.matmul %66, %55, %cst_27 {dimension_numbers = #tpu.dot_dimension_numbers<[1], [0], [0], [1], [0, 0, 1, 1], [], []>} : vector<8x8xf32>, vector<8x8xf32>, vector<8x8xf32> -> vector<8x8xf32>
    %71 = vector.extract_strided_slice %30 {offsets = [0, 16], sizes = [8, 8], strides = [1, 1]} : vector<8x96xf32> to vector<8x8xf32>
    %cst_28 = arith.constant 0.353553385 : f32
    %72 = vector.broadcast %cst_28 : f32 to vector<8x8xf32>
    %73 = arith.mulf %71, %72 : vector<8x8xf32>
    %74 = vector.extract_strided_slice %30 {offsets = [0, 48], sizes = [8, 8], strides = [1, 1]} : vector<8x96xf32> to vector<8x8xf32>
    %75 = vector.extract_strided_slice %30 {offsets = [0, 80], sizes = [8, 8], strides = [1, 1]} : vector<8x96xf32> to vector<8x8xf32>
    %cst_29 = arith.constant dense<0.000000e+00> : vector<8x8xf32>
    %76 = tpu.matmul %73, %74, %cst_29 {dimension_numbers = #tpu.dot_dimension_numbers<[1], [1], [0], [0], [0, 0, 1, 0], [], []>} : vector<8x8xf32>, vector<8x8xf32>, vector<8x8xf32> -> vector<8x8xf32>
    %cst_30 = arith.constant dense<0xFF800000> : vector<8xf32>
    %77 = vector.multi_reduction <maximumf>, %76, %cst_30 [1] : vector<8x8xf32> to vector<8xf32>
    %78 = vector.shape_cast %77 : vector<8xf32> to vector<8x1xf32>
    %79 = vector.broadcast %78 : vector<8x1xf32> to vector<8x8xf32>
    %80 = arith.subf %76, %79 : vector<8x8xf32>
    %81 = math.exp %80 : vector<8x8xf32>
    %cst_31 = arith.constant dense<0.000000e+00> : vector<8xf32>
    %82 = vector.multi_reduction <add>, %81, %cst_31 [1] : vector<8x8xf32> to vector<8xf32>
    %83 = vector.shape_cast %82 : vector<8xf32> to vector<8x1xf32>
    %84 = tpu.reciprocal %83 {approx = true} : vector<8x1xf32> -> vector<8x1xf32>
    %85 = vector.broadcast %84 : vector<8x1xf32> to vector<8x8xf32>
    %86 = arith.mulf %81, %85 : vector<8x8xf32>
    %c2 = arith.constant 2 : index
    %c0_32 = arith.constant 0 : index
    %c0_33 = arith.constant 0 : index
    %c0_34 = arith.constant 0 : index
    %87 = vector.load %arg5[%c2, %c0_32, %c0_33, %c0_34] : memref<4x1x8x8xf32, #tpu.memory_space<vmem>>, vector<1x1x8x8xf32>
    %88 = vector.shape_cast %87 : vector<1x1x8x8xf32> to vector<8x8xf32>
    %89 = vector.shape_cast %86 : vector<8x8xf32> to vector<1x1x8x8xf32>
    tpu.vector_store %arg5[%c2, %c0_32, %c0_33, %c0_34], %89 {strides = array<i32>} : memref<4x1x8x8xf32, #tpu.memory_space<vmem>>, vector<1x1x8x8xf32>,
    %cst_35 = arith.constant dense<0.000000e+00> : vector<8x8xf32>
    %90 = tpu.matmul %86, %75, %cst_35 {dimension_numbers = #tpu.dot_dimension_numbers<[1], [0], [0], [1], [0, 0, 1, 1], [], []>} : vector<8x8xf32>, vector<8x8xf32>, vector<8x8xf32> -> vector<8x8xf32>
    %91 = vector.extract_strided_slice %30 {offsets = [0, 24], sizes = [8, 8], strides = [1, 1]} : vector<8x96xf32> to vector<8x8xf32>
    %cst_36 = arith.constant 0.353553385 : f32
    %92 = vector.broadcast %cst_36 : f32 to vector<8x8xf32>
    %93 = arith.mulf %91, %92 : vector<8x8xf32>
    %94 = vector.extract_strided_slice %30 {offsets = [0, 56], sizes = [8, 8], strides = [1, 1]} : vector<8x96xf32> to vector<8x8xf32>
    %95 = vector.extract_strided_slice %30 {offsets = [0, 88], sizes = [8, 8], strides = [1, 1]} : vector<8x96xf32> to vector<8x8xf32>
    %cst_37 = arith.constant dense<0.000000e+00> : vector<8x8xf32>
    %96 = tpu.matmul %93, %94, %cst_37 {dimension_numbers = #tpu.dot_dimension_numbers<[1], [1], [0], [0], [0, 0, 1, 0], [], []>} : vector<8x8xf32>, vector<8x8xf32>, vector<8x8xf32> -> vector<8x8xf32>
    %cst_38 = arith.constant dense<0xFF800000> : vector<8xf32>
    %97 = vector.multi_reduction <maximumf>, %96, %cst_38 [1] : vector<8x8xf32> to vector<8xf32>
    %98 = vector.shape_cast %97 : vector<8xf32> to vector<8x1xf32>
    %99 = vector.broadcast %98 : vector<8x1xf32> to vector<8x8xf32>
    %100 = arith.subf %96, %99 : vector<8x8xf32>
    %101 = math.exp %100 : vector<8x8xf32>
    %cst_39 = arith.constant dense<0.000000e+00> : vector<8xf32>
    %102 = vector.multi_reduction <add>, %101, %cst_39 [1] : vector<8x8xf32> to vector<8xf32>
    %103 = vector.shape_cast %102 : vector<8xf32> to vector<8x1xf32>
    %104 = tpu.reciprocal %103 {approx = true} : vector<8x1xf32> -> vector<8x1xf32>
    %105 = vector.broadcast %104 : vector<8x1xf32> to vector<8x8xf32>
    %106 = arith.mulf %101, %105 : vector<8x8xf32>
    %c3 = arith.constant 3 : index
    %c0_40 = arith.constant 0 : index
    %c0_41 = arith.constant 0 : index
    %c0_42 = arith.constant 0 : index
    %107 = vector.load %arg5[%c3, %c0_40, %c0_41, %c0_42] : memref<4x1x8x8xf32, #tpu.memory_space<vmem>>, vector<1x1x8x8xf32>
    %108 = vector.shape_cast %107 : vector<1x1x8x8xf32> to vector<8x8xf32>
    %109 = vector.shape_cast %106 : vector<8x8xf32> to vector<1x1x8x8xf32>
    tpu.vector_store %arg5[%c3, %c0_40, %c0_41, %c0_42], %109 {strides = array<i32>} : memref<4x1x8x8xf32, #tpu.memory_space<vmem>>, vector<1x1x8x8xf32>,
    %cst_43 = arith.constant dense<0.000000e+00> : vector<8x8xf32>
    %110 = tpu.matmul %106, %95, %cst_43 {dimension_numbers = #tpu.dot_dimension_numbers<[1], [0], [0], [1], [0, 0, 1, 1], [], []>} : vector<8x8xf32>, vector<8x8xf32>, vector<8x8xf32> -> vector<8x8xf32>
    %111 = tpu.concatenate %50, %70, %90, %110 in 1 : vector<8x8xf32>, vector<8x8xf32>, vector<8x8xf32>, vector<8x8xf32> -> vector<8x32xf32>
    %112 = arith.addf %28, %111 : vector<8x32xf32>
    %cst_44 = arith.constant dense<0.000000e+00> : vector<8xf32>
    %113 = vector.multi_reduction <add>, %112, %cst_44 [1] : vector<8x32xf32> to vector<8xf32>
    %114 = vector.shape_cast %113 : vector<8xf32> to vector<8x1xf32>
    %cst_45 = arith.constant 3.200000e+01 : f32
    %115 = vector.broadcast %cst_45 : f32 to vector<8x1xf32>
    %116 = arith.divf %114, %115 : vector<8x1xf32>
    %117 = vector.broadcast %116 : vector<8x1xf32> to vector<8x32xf32>
    %118 = arith.subf %112, %117 : vector<8x32xf32>
    %119 = arith.mulf %118, %118 : vector<8x32xf32>
    %cst_46 = arith.constant dense<0.000000e+00> : vector<8xf32>
    %120 = vector.multi_reduction <add>, %119, %cst_46 [1] : vector<8x32xf32> to vector<8xf32>
    %121 = vector.shape_cast %120 : vector<8xf32> to vector<8x1xf32>
    %cst_47 = arith.constant 3.200000e+01 : f32
    %122 = vector.broadcast %cst_47 : f32 to vector<8x1xf32>
    %123 = arith.divf %121, %122 : vector<8x1xf32>
    %cst_48 = arith.constant 9.99999974E-6 : f32
    %124 = vector.broadcast %cst_48 : f32 to vector<8x1xf32>
    %125 = arith.addf %123, %124 : vector<8x1xf32>
    %126 = math.rsqrt %125 : vector<8x1xf32>
    %127 = vector.broadcast %126 : vector<8x1xf32> to vector<8x32xf32>
    %128 = arith.mulf %118, %127 : vector<8x32xf32>
    %129 = vector.broadcast %5 : vector<1x32xf32> to vector<8x32xf32>
    %130 = arith.mulf %128, %129 : vector<8x32xf32>
    %131 = vector.broadcast %6 : vector<1x32xf32> to vector<8x32xf32>
    %132 = arith.addf %130, %131 : vector<8x32xf32>
    %133 = arith.addf %1, %111 : vector<8x32xf32>
    %cst_49 = arith.constant dense<0.000000e+00> : vector<8xf32>
    %134 = vector.multi_reduction <add>, %133, %cst_49 [1] : vector<8x32xf32> to vector<8xf32>
    %135 = vector.shape_cast %134 : vector<8xf32> to vector<8x1xf32>
    %cst_50 = arith.constant 3.200000e+01 : f32
    %136 = vector.broadcast %cst_50 : f32 to vector<8x1xf32>
    %137 = arith.divf %135, %136 : vector<8x1xf32>
    %138 = vector.broadcast %137 : vector<8x1xf32> to vector<8x32xf32>
    %139 = arith.subf %133, %138 : vector<8x32xf32>
    %140 = arith.mulf %139, %139 : vector<8x32xf32>
    %cst_51 = arith.constant dense<0.000000e+00> : vector<8xf32>
    %141 = vector.multi_reduction <add>, %140, %cst_51 [1] : vector<8x32xf32> to vector<8xf32>
    %142 = vector.shape_cast %141 : vector<8xf32> to vector<8x1xf32>
    %cst_52 = arith.constant 3.200000e+01 : f32
    %143 = vector.broadcast %cst_52 : f32 to vector<8x1xf32>
    %144 = arith.divf %142, %143 : vector<8x1xf32>
    %cst_53 = arith.constant 9.99999974E-6 : f32
    %145 = vector.broadcast %cst_53 : f32 to vector<8x1xf32>
    %146 = arith.addf %144, %145 : vector<8x1xf32>
    %147 = math.rsqrt %146 : vector<8x1xf32>
    %148 = vector.broadcast %147 : vector<8x1xf32> to vector<8x32xf32>
    %149 = arith.mulf %139, %148 : vector<8x32xf32>
    %150 = vector.broadcast %7 : vector<1x32xf32> to vector<8x32xf32>
    %151 = arith.mulf %149, %150 : vector<8x32xf32>
    %152 = vector.broadcast %8 : vector<1x32xf32> to vector<8x32xf32>
    %153 = arith.addf %151, %152 : vector<8x32xf32>
    %154 = arith.addf %132, %153 : vector<8x32xf32>
    %c0_54 = arith.constant 0 : index
    %c0_55 = arith.constant 0 : index
    %c0_56 = arith.constant 0 : index
    %155 = vector.load %arg4[%c0_54, %c0_55, %c0_56] : memref<1x8x32xf32, #tpu.memory_space<vmem>>, vector<1x8x32xf32>
    %156 = vector.shape_cast %155 : vector<1x8x32xf32> to vector<8x32xf32>
    %157 = vector.shape_cast %154 : vector<8x32xf32> to vector<1x8x32xf32>
    tpu.vector_store %arg4[%c0_54, %c0_55, %c0_56], %157 {strides = array<i32>} : memref<1x8x32xf32, #tpu.memory_space<vmem>>, vector<1x8x32xf32>,
    return
  }
  func.func @transform_0(%arg0: i32) -> (i32, i32, i32) {
    %c0_i32 = arith.constant 0 : i32
    %c0_i32_0 = arith.constant 0 : i32
    %c0_i32_1 = arith.constant 0 : i32
    return %arg0, %c0_i32, %c0_i32_0 : i32, i32, i32
  }
  func.func @transform_1(%arg0: i32) -> (i32, i32) {
    %c0_i32 = arith.constant 0 : i32
    %c0_i32_0 = arith.constant 0 : i32
    %c0_i32_1 = arith.constant 0 : i32
    return %c0_i32, %c0_i32_0 : i32, i32
  }
  func.func @transform_2(%arg0: i32) -> (i32, i32) {
    %c0_i32 = arith.constant 0 : i32
    %c0_i32_0 = arith.constant 0 : i32
    %c0_i32_1 = arith.constant 0 : i32
    return %c0_i32, %c0_i32_0 : i32, i32
  }
  func.func @transform_3(%arg0: i32) -> (i32, i32, i32) {
    %c0_i32 = arith.constant 0 : i32
    %c0_i32_0 = arith.constant 0 : i32
    %c0_i32_1 = arith.constant 0 : i32
    return %arg0, %c0_i32, %c0_i32_0 : i32, i32, i32
  }
  func.func @transform_4(%arg0: i32) -> (i32, i32, i32, i32) {
    %c0_i32 = arith.constant 0 : i32
    %c0_i32_0 = arith.constant 0 : i32
    %c0_i32_1 = arith.constant 0 : i32
    %c0_i32_2 = arith.constant 0 : i32
    return %c0_i32, %arg0, %c0_i32_0, %c0_i32_1 : i32, i32, i32, i32
  }
}

</mosaic_0001>

<bundles_post_ra>
// kernel: tpu_custom_call.1
= control target key start
LH: loop header
LB: loop body
LE: loop exit
PB: predicated region body
PF: predicated region fallthrough
CT: control target
= control target key end

     0   :  { %10 = vsyncpa [#allocation3], 0  ;;  %s1462_s0 = inlined_call_operand.hbm [shape: f32[2,8,32], index: 0, kind: input, shape index: {}]   ;;  %s1463_s1 = inlined_call_operand.hbm [shape: f32[32,96], index: 1, kind: input, shape index: {}]   ;;  %s1464_s2 = inlined_call_operand.hbm [shape: f32[6,32], index: 2, kind: input, shape index: {}]   ;;  %s1465_s3 = inlined_call_operand.hbm [shape: f32[2,8,32], index: 3, kind: output, shape index: {0}]   ;;  %s1466_s4 = inlined_call_operand.hbm [shape: f32[4,2,8,8], index: 4, kind: output, shape index: {1}]  }
   0x1   :  { %12 = vsyncpa [#allocation3 + $0x1], 0 }
   0x2   :  { %13 = vsyncpa [#allocation6], 0 }
   0x3   :  { %14 = vsyncpa [#allocation4], 0 }
   0x4   :  { %16 = vsyncpa [#allocation4 + $0x1], 0 }
   0x5   :  { %17 = vsyncpa [#allocation10], 0 }
   0x6   :  { %19 = vsyncpa [#allocation10 + $0x1], 0  ;;  %s1211_s15 = smov 0   ;;  %s1213_s16 = smov 0  }
   0x7   :  { %s1215_s17 = smov 0   ;;  %s1217_s18 = smov 0  }
   0x8 LB: > { %s161_s21 = sshll.u32 %s1463_s1, 4  ;;  %s1235_s22 = sadd.s32 4294967295, %s1163_s18   ;;  %s1163_s18 = sphi %s1217_s18, %s1477_s18   ;;  %s1159_s17 = sphi %s1215_s17, %s1476_s17   ;;  %s1155_s16 = sphi %s1213_s16, %s1475_s16   ;;  %s1151_s15 = sphi %s1211_s15, %s1474_s15   ;;  %s162_s21 = int_to_ptr.hbm [resolvable:$true] %s161_s21 }
   0x9   : > { %p822_p0 = scmp.ge.s32.totalorder %s1163_s18, 1  ;;  %p46_p1 = scmp.eq.s32.totalorder %s1235_s22, 0 }
   0xa   : > { %p150_p2 = scmp.lt.s32.totalorder %s1163_s18, 3  ;;  %s1165_s24 = smov [#allocation5]  }
   0xb   : > { %s163_s25 = sshll.u32 %s1165_s24, 4  ;;  %s176_s28 = sshll.u32 %s1464_s2, 4  ;;  %s164_s25 = int_to_ptr.vmem [resolvable:$true] %s163_s25  ;;  %s177_s28 = int_to_ptr.hbm [resolvable:$true] %s176_s28 }
   0xc   : > { %p1240_p3 = pnand %p822_p0, %p150_p2  ;;  %s1166_s29 = smov [#allocation7]  }
   0xd   : > { %s178_s30 = sshll.u32 %s1166_s29, 4  ;;  %s1167_s5 = smov 128   ;;  %s179_s30 = int_to_ptr.vmem [resolvable:$true] %s178_s30 }
   0xe   : > { %p870_p4 = pneg %p1240_p3  ;;  %s1168_s6 = smov 8  }
   0xf   : > { %s821_s7 = sadd.s32 4294967294, %s1163_s18   ;;  %s1254_s8 = sadd.s32 1, %s1163_s18  }
  0x10   : > { %p871_p6 = pnand %p870_p4, %p46_p1  ;;  %s29_s9 = ssub.s32 %s1163_s18, %s1254_s8 }
  0x11   : > { %s32_s10 = sadd.s32 1, %s1159_s17  ;;  %p30_p7 = scmp.eq.s32.totalorder %s29_s9, 0 }
  0x12   : > { %873 = dma.hbm_to_vmem [thread:$0]  (!%p871_p6), %s162_s21, 512, %s164_s25, [#allocation6], %s1167_s5, %s1167_s5, %s1168_s6  }
  0x13   : > { %876 = dma.hbm_to_vmem [thread:$0]  (!%p871_p6), %s177_s28, 128, %s179_s30, [#allocation6]  }
  0x14   : > { %p39_p8 = scmp.ne.s32.totalorder %s1159_s17, %s1155_s16  ;;  %p40_p9 = scmp.eq.s32.totalorder %s1163_s18, 0 }
  0x15   : > { %p45_p10 = scmp.ne.s32.totalorder %s1155_s16, %s1151_s15  ;;  %p111_p13 = scmp.eq.s32.totalorder %s1235_s22, 1 }
  0x16   : > { %s1265_s11 = scalar_select %p30_p7, %s1159_s17, %s32_s10  }
  0x17   : > { %p1267_p11 = por %p40_p9, %p39_p8  ;;  %p1273_p12 = por %p46_p1, %p45_p10 }
  0x18   : > { %p117_p0 = scmp.eq.s32.totalorder %s821_s7, 1  ;;  %p890_p2 = scmp.lt.s32.totalorder %s1163_s18, 2 }
  0x19   : > { %s189_s14 = sand.u32 1, %s1159_s17   ;;  %p1280_p4 = por %p111_p13, %p39_p8 }
  0x1a   : > { %p1284_p6 = por %p117_p0, %p45_p10  ;;  %s826_s21 = sshll.u32 %s189_s14, 3 }
  0x1b   : > { %s827_s24 = sshll.u32 %s1163_s18, 3  ;;  %s193_s28 = scalar_lea.vmem [#allocation2], %s826_s21 }
  0x1c   : > { %s197_s27 = scalar_lea.hbm %s1462_s0, %s827_s24  ;;  %s201_s29 = sshll.u32 %s193_s28, 4  ;;  %s202_s29 = int_to_ptr.vmem [resolvable:$true] %s201_s29 }
  0x1d   : > { %s199_s30 = sshll.u32 %s197_s27, 4  ;;  %p1294_p7 = pnand %p890_p2, %p1267_p11  ;;  %s200_s30 = int_to_ptr.hbm [resolvable:$true] %s199_s30 }
  0x1e   : > { %s190_s6 = scalar_lea.sflag [#allocation3], %s189_s14  ;;  %s1031_s7 = sshra.s32 %s200_s30, 4  ;;  %s1032_s7 = int_to_ptr.hbm [resolvable:$true] %s1031_s7 }
  0x1f   : > { %s1033_s9 = scalar_lea.hbm %s1032_s7, 8  ;;  %p1035_p9 = pneg %p1294_p7 }
  0x20   : > { %p1034_p8 = scmp.ne.s32.totalorder %s1032_s7, %s1033_s9  ;;  %s1038_s24 = scalar_lea.hbm %s1462_s0, 16 }
  0x21   : > { %p1039_p11 = scmp.lt.s32.totalorder %s1032_s7, %s1462_s0  ;;  %p1040_p0 = scmp.lt.s32.totalorder %s1038_s24, %s1033_s9 }
  0x22   : > { %p1036_p10 = pnand %p1035_p9, %p1034_p8 }
  0x23   : > { %p1041_p2 = por %p1040_p0, %p1039_p11 }
  0x24   : > { %p1037_p13 = pneg %p1036_p10 }
  0x26   : > { %p1042_p5 = pnand %p1041_p2, %p1037_p13 }
  0x28   : > { %1045 = shalt.err (!%p1042_p5)
}
  0x29   : > { %880 = dma.hbm_to_vmem [thread:$0]  (!%p1294_p7), %s200_s30, 128, %s202_s29, %s190_s6  }
  0x2a   : > { %210 = sbr.rel (%p1240_p3) target bundleno = 1499 (0x5db), region = 32  ;;  %s1311_s14 = sand.u32 (!%p1240_p3), 1, %s1155_s16  }
  0x2b   : > { %s829_s26 = sshll.u32 (!%p1240_p3), %s1311_s14, 3  ;;  %s213_s27 = scalar_lea.sflag (!%p1240_p3), [#allocation3], %s1311_s14 }
  0x2c   : > { %s216_s28 = scalar_lea.vmem (!%p1240_p3), [#allocation2], %s829_s26 }
  0x2f   : > { %1134 = dma.done.wait (%p1273_p12), %s213_s27, 128  }
  0x30   : > { %1136 = vsyncadd (%p1273_p12), %s213_s27, 4294967168 }
  0x31   : > { %1138 = dma.done.wait (%p46_p1), [#allocation6], 640  }
  0x32   : > { %1140 = vsyncadd (%p46_p1), [#allocation6], 4294966656  ;;  %vm259_vm0 = vcmask 261120   ;;  %v1325_v0 = vld [vmem:[%s216_s28] sm:$0xff]  ;;  %v1169_v2 = vmov 32.0   ;;  %v294_v16 = vld [vmem:[#allocation5 + $0x8] sm:$0xff] }
  0x33   : > { %v260_v1 = vsel %vm259_vm0, %v1325_v0, 0.0  ;;  %947 = vrcp.f32 %v1169_v2  ;;  %v296_v14 = vld [vmem:[#allocation5 + $0x18] sm:$0xff]  ;;  %v295_v15 = vld [vmem:[#allocation5 + $0x10] sm:$0xff]  ;;  %v293_v17 = vld [vmem:[#allocation5] sm:$0xff]  ;;  %s1170_s23 = smov 72   ;;  %s1171_s13 = smov 96  }
  0x34   : > { %261 = vadd.xlane.f32.xlu0 %v260_v1  ;;  %312 = vmatpush.msra.mxu0 %v296_v14  ;;  %v1335_v26 = vld [vmem:[#allocation7] sm:$0x3f]  ;;  %s1172_s29 = smov 120   ;;  %s1173_s30 = smov 88   ;;  %vm324_vm5 = vcmask 64512   ;;  %vm602_vm6 = vcmask 130048  }
  0x35   : > { %v289_v28 = vperm.slane %v1335_v26, 0  ;;  %v291_v31 = vperm.slane %v1335_v26, 1  ;;  %s1174_s5 = smov 80   ;;  %s1175_s6 = smov 112   ;;  %vm604_vm7 = vcmask 195584  }
  0x36   : > { %313 = vmatpush.msra.mxu0 %v295_v15  ;;  %s1176_s7 = smov 104   ;;  %s1177_s9 = smov 64  }
  0x37   : > { %s1178_s10 = smov 40   ;;  %s1179_s21 = smov 56  }
  0x38   : > { %314 = vmatpush.msra.mxu0 %v294_v16  ;;  %s1180_s24 = smov 48   ;;  %s833_s25 = sshll.u32 %s1311_s14, 5 }
  0x39   : > { %v948_v3 = vpop.eup %947  ;;  %s1371_s12 = scalar_lea.vmem [#allocation9], %s833_s25  ;;  %s1181_s27 = smov 16  }
  0x3a   : > { %v264_v4 = vmul.f32 32.0, %v948_v3  ;;  %vm268_vm1 = vweird.f32 %v948_v3  ;;  %315 = vmatpush.msra.mxu0 %v293_v17  ;;  %s1182_s28 = smov 8  }
  0x3c   : > { %v265_v5 = vsub.f32 1.0, %v264_v4 }
  0x3e   : > { %v266_v6 = vmul.f32 %v948_v3, %v265_v5 }
  0x40   : > { %v267_v7 = vadd.f32 %v948_v3, %v266_v6 }
  0x42   : > { %v1329_v8 = vsel %vm268_vm1, %v948_v3, %v267_v7 }
  0xa7   : > { %v262_v9 = vpop.xlane.xlu0 %261 }
  0xa8   : > { %v270_v10 = vmul.f32 %v1329_v8, %v262_v9 }
  0xaa   : > { %v271_v11 = vsub.f32 %v1325_v0, %v270_v10 }
  0xac   : > { %v272_v12 = vmul.f32 %v271_v11, %v271_v11 }
  0xae   : > { %v273_v13 = vsel %vm259_vm0, %v272_v12, 0.0 }
  0xaf   : > { %274 = vadd.xlane.f32.xlu0 %v273_v13 }
 0x122   : > { %v275_v18 = vpop.xlane.xlu0 %274 }
 0x123   : > { %v276_v19 = vmul.f32 %v275_v18, %v1329_v8 }
 0x125   : > { %v277_v20 = vadd.f32 1e-05, %v276_v19 }
 0x127   : > { %949 = vrsqrt.f32 %v277_v20  ;;  %vm284_vm3 = vweird.f32 %v277_v20 }
 0x12d   : > { %v950_v21 = vpop.eup %949 }
 0x12e   : > { %v279_v22 = vmul.f32 %v950_v21, %v277_v20  ;;  %vm285_vm2 = vweird.f32 %v950_v21 }
 0x12f   : > { %vm286_vm4 = vmor %vm284_vm3, %vm285_vm2 }
 0x130   : > { %v280_v23 = vmul.f32 %v950_v21, %v279_v22 }
 0x132   : > { %v281_v24 = vmul.f32 0.5, %v280_v23 }
 0x134   : > { %v282_v25 = vsub.f32 1.5, %v281_v24 }
 0x136   : > { %v283_v27 = vmul.f32 %v950_v21, %v282_v25 }
 0x138   : > { %v287_v29 = vsel %vm286_vm4, %v950_v21, %v283_v27 }
 0x139   : > { %v288_v30 = vmul.f32 %v287_v29, %v271_v11 }
 0x13b   : > { %v290_v32 = vmul.f32 %v289_v28, %v288_v30 }
 0x13d   : > { %v1339_v33 = vadd.f32 %v291_v31, %v290_v32 }
 0x13f   : > { %834 = vmatmul.msk.f32.vlgmr.msra.gmra.mxu0 %vm259_vm0, %v1339_v33 }
 0x1bc   : > { %v1343_v34 = vpop.f32.mrf.mxu0 }
 0x1bd   : > { %524 = vrot.lane.b32.xlu0 %v1343_v34, %s1170_s23  ;;  %322 = vrot.lane.b32.xlu1 %v1343_v34, %s1171_s13  ;;  %v320_v35 = vmul.f32 0.35355338, %v1343_v34  ;;  %s1183_s23 = smov 24   ;;  %s852_s13 = sshll.u32 %s1235_s22, 3 }
 0x1bf   : > { %388 = vrot.lane.b32.xlu2 %v320_v35, %s1172_s29  ;;  %s693_s29 = sshll.u32 %s1371_s12, 4  ;;  %s694_s29 = int_to_ptr.vmem [resolvable:$true] %s693_s29 }
 0x1c5   : > { %390 = vrot.lane.b32.xlu1 %v1343_v34, %s1173_s30 }
 0x1c7   : > { %457 = vrot.lane.b32.xlu2 %v1343_v34, %s1174_s5 }
 0x1cd   : > { %455 = vrot.lane.b32.xlu1 %v320_v35, %s1175_s6  ;;  %s692_s6 = scalar_lea.hbm %s1466_s4, %s852_s13 }
 0x1cf   : > { %522 = vrot.lane.b32.xlu2 %v320_v35, %s1176_s7  ;;  %s695_s7 = sshll.u32 %s692_s6, 4  ;;  %s696_s7 = int_to_ptr.hbm [resolvable:$true] %s695_s7 }
 0x219   : > { %v389_v36 = vpop.permute.xlu2 %388 }
 0x221   : > { %v458_v37 = vpop.permute.xlu2 %457 }
 0x229   : > { %v523_v40 = vpop.permute.xlu2 %522 }
 0x22f   : > { %v525_v38 = vpop.permute.xlu0 %524  ;;  %v323_v39 = vpop.permute.xlu1 %322 }
 0x230   : > { %835 = vmatpush.xpose.msk.msra.mxu1 %vm324_vm5, %v323_v39  ;;  %846 = vmatpush.xpose.msk.msrb.mxu0 %vm324_vm5, %v525_v38 }
 0x233   : > { %836 = vmatmul.msk.f32.vlgmr.msra.gmra.mxu1 %vm324_vm5, %v320_v35  ;;  %847 = vmatmul.msk.f32.vlgmr.msrb.gmra.mxu0 %vm324_vm5, %v523_v40 }
 0x234   : > { %842 = vmatpush.xpose.msk.msrb.mxu1 %vm324_vm5, %v458_v37 }
 0x237   : > { %v391_v41 = vpop.permute.xlu1 %390 }
 0x238   : > { %838 = vmatpush.xpose.msk.msra.mxu3 %vm324_vm5, %v391_v41 }
 0x23b   : > { %839 = vmatmul.msk.f32.vlgmr.msra.gmra.mxu3 %vm324_vm5, %v389_v36 }
 0x23f   : > { %v456_v42 = vpop.permute.xlu1 %455 }
 0x240   : > { %843 = vmatmul.msk.f32.vlgmr.msrb.gmra.mxu1 %vm324_vm5, %v456_v42 }
 0x2b0   : > { %v347_v43 = vpop.f32.mrf.mxu1  ;;  %v547_v49 = vpop.f32.mrf.mxu0 }
 0x2b1   : > { %v350_v44 = vsel %vm324_vm5, %v347_v43, -inf  ;;  %v550_v50 = vsel %vm324_vm5, %v547_v49, -inf }
 0x2b2   : > { %351 = vmax.xlane.f32.xlu1 %v350_v44 }
 0x2bd   : > { %v480_v45 = vpop.f32.mrf.mxu1 }
 0x2be   : > { %v413_v46 = vpop.f32.mrf.mxu3  ;;  %v483_v47 = vsel %vm324_vm5, %v480_v45, -inf }
 0x2bf   : > { %484 = vmax.xlane.f32.xlu0 %v483_v47  ;;  %v416_v48 = vsel %vm324_vm5, %v413_v46, -inf }
 0x2c0   : > { %417 = vmax.xlane.f32.xlu2 %v416_v48 }
 0x2c8   : > { %551 = vmax.xlane.f32.xlu2 %v550_v50 }
 0x2cb   : > { %362 = vrot.lane.b32.xlu1 %v1343_v34, %s1177_s9  ;;  %s668_s9 = scalar_lea.sflag [#allocation10], %s1311_s14 }
 0x325   : > { %v352_v51 = vpop.xlane.xlu1 %351 }
 0x326   : > { %v353_v52 = vsub.f32 %v347_v43, %v352_v51 }
 0x328   : > { %v354_v53 = vmul.f32 1.442695, %v353_v52 }
 0x32a   : > { %951 = vpow2.f32 %v354_v53 }
 0x330   : > { %v952_v54 = vpop.eup %951 }
 0x331   : > { %v356_v55 = vsel %vm324_vm5, %v952_v54, 0.0 }
 0x332   : > { %v485_v56 = vpop.xlane.xlu0 %484  ;;  %357 = vadd.xlane.f32.xlu1 %v356_v55 }
 0x333   : > { %v486_v57 = vsub.f32 %v480_v45, %v485_v56  ;;  %v418_v58 = vpop.xlane.xlu2 %417 }
 0x334   : > { %v419_v1 = vsub.f32 %v413_v46, %v418_v58 }
 0x335   : > { %v487_v59 = vmul.f32 1.442695, %v486_v57 }
 0x336   : > { %v420_v4 = vmul.f32 1.442695, %v419_v1 }
 0x337   : > { %953 = vpow2.f32 %v487_v59 }
 0x33b   : > { %v552_v60 = vpop.xlane.xlu2 %551 }
 0x33c   : > { %v553_v61 = vsub.f32 %v547_v49, %v552_v60 }
 0x33d   : > { %v954_v62 = vpop.eup %953  ;;  %v363_v63 = vpop.permute.xlu1 %362 }
 0x33e   : > { %v554_v2 = vmul.f32 1.442695, %v553_v61  ;;  %383 = vmatpush.msra.mxu2 %v363_v63  ;;  %v489_v3 = vsel %vm324_vm5, %v954_v62, 0.0 }
 0x33f   : > { %490 = vadd.xlane.f32.xlu0 %v489_v3 }
 0x340   : > { %955 = vpow2.f32 %v554_v2 }
 0x341   : > { %957 = vpow2.f32 %v420_v4 }
 0x346   : > { %v956_v5 = vpop.eup %955 }
 0x347   : > { %v556_v6 = vsel %vm324_vm5, %v956_v5, 0.0  ;;  %v958_v7 = vpop.eup %957 }
 0x348   : > { %557 = vadd.xlane.f32.xlu2 %v556_v6  ;;  %v422_v9 = vsel %vm324_vm5, %v958_v7, 0.0 }
 0x34b   : > { %563 = vrot.lane.b32.xlu1 %v1343_v34, %s1178_s10  ;;  %s1075_s10 = sshra.s32 %s696_s7, 4  ;;  %s1076_s10 = int_to_ptr.hbm [resolvable:$true] %s1075_s10 }
 0x34c   : > { %p1082_p12 = scmp.lt.s32.totalorder %s1076_s10, %s1466_s4 }
 0x350   : > { %423 = vadd.xlane.f32.xlu2 %v422_v9 }
 0x353   : > { %429 = vrot.lane.b32.xlu0 %v1343_v34, %s1179_s21  ;;  %s1077_s21 = scalar_lea.hbm %s1076_s10, 32 }
 0x354   : > { %p1078_p1 = scmp.ne.s32.totalorder %s1076_s10, %s1077_s21 }
 0x356   : > { %p1079_p3 = pnand %p1078_p1, %p1280_p4 }
 0x358   : > { %p1080_p5 = pneg %p1079_p3 }
 0x368   : > { %496 = vrot.lane.b32.xlu2 %v1343_v34, %s1180_s24 }
 0x3a5   : > { %v358_v10 = vpop.xlane.xlu1 %357 }
 0x3a6   : > { %959 = vrcp.f32 %v358_v10 }
 0x3ac   : > { %v960_v11 = vpop.eup %959 }
 0x3ad   : > { %v360_v12 = vmul.f32 %v960_v11, %v952_v54 }
 0x3af   : > { %361 = vst.msk [vmem:[%s1371_s12] sm:$0xff] %vm324_vm5, %v360_v12  ;;  %837 = vmatmul.msk.f32.vlgmr.msra.gmra.mxu2 %vm324_vm5, %v360_v12 }
 0x3b2   : > { %v491_v13 = vpop.xlane.xlu0 %490 }
 0x3b3   : > { %961 = vrcp.f32 %v491_v13 }
 0x3b9   : > { %v962_v14 = vpop.eup %961 }
 0x3ba   : > { %v493_v15 = vmul.f32 %v962_v14, %v954_v62 }
 0x3bb   : > { %v558_v16 = vpop.xlane.xlu2 %557 }
 0x3bc   : > { %963 = vrcp.f32 %v558_v16  ;;  %844 = vst.msk [vmem:[%s1371_s12 + $0x10] sm:$0xff] %vm324_vm5, %v493_v15 }
 0x3bd   : > { %v564_v21 = vpop.permute.xlu1 %563 }
 0x3c2   : > { %v964_v17 = vpop.eup %963 }
 0x3c3   : > { %v560_v18 = vmul.f32 %v964_v17, %v956_v5  ;;  %v424_v19 = vpop.xlane.xlu2 %423 }
 0x3c4   : > { %965 = vrcp.f32 %v424_v19 }
 0x3c5   : > { %848 = vst.msk [vmem:[%s1371_s12 + $0x18] sm:$0xff] %vm324_vm5, %v560_v18  ;;  %v430_v20 = vpop.permute.xlu0 %429 }
 0x3c6   : > { %450 = vmatpush.msrb.mxu2 %v430_v20 }
 0x3c8   : > { %584 = vmatpush.msra.mxu2 %v564_v21 }
 0x3ca   : > { %v966_v22 = vpop.eup %965 }
 0x3cb   : > { %v497_v23 = vpop.permute.xlu2 %496  ;;  %v426_v24 = vmul.f32 %v966_v22, %v958_v7 }
 0x3cc   : > { %517 = vmatpush.msrb.mxu3 %v497_v23 }
 0x3cd   : > { %840 = vst.msk [vmem:[%s1371_s12 + $0x8] sm:$0xff] %vm324_vm5, %v426_v24  ;;  %841 = vmatmul.msk.f32.vlgmr.msrb.gmra.mxu2 %vm324_vm5, %v426_v24  ;;  %845 = vmatmul.msk.f32.vlgmr.msrb.gmra.mxu3 %vm324_vm5, %v493_v15  ;;  %s1081_s12 = scalar_lea.hbm %s1466_s4, 64 }
 0x3ce   : > { %p1083_p7 = scmp.lt.s32.totalorder %s1081_s12, %s1077_s21 }
 0x3d0   : > { %p1084_p8 = por %p1083_p7, %p1082_p12 }
 0x3d2   : > { %p1085_p9 = pnand %p1084_p8, %p1080_p5 }
 0x3d5   : > { %849 = vmatmul.msk.f32.vlgmr.msra.gmra.mxu2 %vm324_vm5, %v560_v18 }
 0x432   : > { %v385_v25 = vpop.f32.mrf.mxu2 }
 0x450   : > { %v452_v27 = vpop.f32.mrf.mxu2  ;;  %v519_v28 = vpop.f32.mrf.mxu3 }
 0x451   : > { %594 = vrot.lane.b32.xlu1 %v519_v28, %s1181_s27  ;;  %590 = vrot.lane.b32.xlu0 %v452_v27, %s1182_s28 }
 0x458   : > { %v586_v29 = vpop.f32.mrf.mxu2 }
 0x459   : > { %598 = vrot.lane.b32.xlu2 %v586_v29, %s1183_s23 }
 0x4b3   : > { %v599_v34 = vpop.permute.xlu2 %598 }
 0x4c3   : > { %v591_v30 = vpop.permute.xlu0 %590  ;;  %v595_v31 = vpop.permute.xlu1 %594 }
 0x4c4   : > { %v601_v32 = vsel %vm324_vm5, %v385_v25, %v591_v30 }
 0x4c5   : > { %v603_v35 = vsel %vm602_vm6, %v601_v32, %v595_v31 }
 0x4c6   : > { %v605_v36 = vsel %vm604_vm7, %v603_v35, %v599_v34 }
 0x4c7   : > { %v633_v37 = vadd.f32 %v605_v36, %v1325_v0  ;;  %v606_v38 = vadd.f32 %v605_v36, %v1339_v33 }
 0x4c9   : > { %v634_v39 = vsel %vm259_vm0, %v633_v37, 0.0  ;;  %v607_v40 = vsel %vm259_vm0, %v606_v38, 0.0 }
 0x4ca   : > { %635 = vadd.xlane.f32.xlu1 %v634_v39  ;;  %608 = vadd.xlane.f32.xlu0 %v607_v40 }
 0x53d   : > { %v636_v41 = vpop.xlane.xlu1 %635  ;;  %v609_v42 = vpop.xlane.xlu0 %608 }
 0x53e   : > { %v637_v43 = vmul.f32 %v636_v41, %v1329_v8  ;;  %v610_v44 = vmul.f32 %v609_v42, %v1329_v8 }
 0x540   : > { %v1393_v45 = vsub.f32 %v633_v37, %v637_v43  ;;  %v611_v0 = vsub.f32 %v606_v38, %v610_v44 }
 0x542   : > { %v639_v33 = vmul.f32 %v1393_v45, %v1393_v45  ;;  %v612_v46 = vmul.f32 %v611_v0, %v611_v0 }
 0x544   : > { %v640_v47 = vsel %vm259_vm0, %v639_v33, 0.0  ;;  %v613_v48 = vsel %vm259_vm0, %v612_v46, 0.0 }
 0x545   : > { %641 = vadd.xlane.f32.xlu0 %v640_v47  ;;  %614 = vadd.xlane.f32.xlu2 %v613_v48 }
 0x546   : > { %1088 = shalt.err (!%p1085_p9)
}
 0x547   : > { %s1184_s30 = smov 128   ;;  %s1185_s5 = smov 256   ;;  %v656_v5 = vperm.slane %v1335_v26, 4  ;;  %v631_v6 = vperm.slane %v1335_v26, 3  ;;  %v658_v10 = vperm.slane %v1335_v26, 5 }
 0x548   : > { %867 = dma.vmem_to_hbm [thread:$0]  (%p1280_p4), %s694_s29, 512, %s696_s7, %s668_s9, %s1184_s30, %s1185_s5, %s1182_s28  }
 0x549   : > { %s678_s6 = scalar_lea.hbm %s1465_s3, %s852_s13  ;;  %s249_s7 = scalar_lea.vmem [#allocation8], %s829_s26 }
 0x54a   : > { %s680_s9 = sshll.u32 %s249_s7, 4  ;;  %s682_s10 = sshll.u32 %s678_s6, 4  ;;  %s681_s9 = int_to_ptr.vmem [resolvable:$true] %s680_s9  ;;  %s683_s10 = int_to_ptr.hbm [resolvable:$true] %s682_s10 }
 0x54b   : > { %s663_s21 = scalar_lea.sflag [#allocation4], %s1311_s14  ;;  %s1103_s22 = sshra.s32 %s683_s10, 4  ;;  %s1104_s22 = int_to_ptr.hbm [resolvable:$true] %s1103_s22 }
 0x54c   : > { %s1105_s24 = scalar_lea.hbm %s1104_s22, 8  ;;  %s1109_s26 = scalar_lea.hbm %s1465_s3, 16 }
 0x54d   : > { %p1106_p10 = scmp.ne.s32.totalorder %s1104_s22, %s1105_s24  ;;  %p1110_p0 = scmp.lt.s32.totalorder %s1104_s22, %s1465_s3 }
 0x54e   : > { %p1111_p2 = scmp.lt.s32.totalorder %s1109_s26, %s1105_s24 }
 0x54f   : > { %p1107_p13 = pnand %p1106_p10, %p1280_p4 }
 0x550   : > { %p1112_p1 = por %p1111_p2, %p1110_p0 }
 0x551   : > { %p1108_p11 = pneg %p1107_p13 }
 0x553   : > { %p1113_p3 = pnand %p1112_p1, %p1108_p11 }
 0x5b8   : > { %v615_v49 = vpop.xlane.xlu2 %614  ;;  %v642_v50 = vpop.xlane.xlu0 %641 }
 0x5b9   : > { %v616_v51 = vmul.f32 %v615_v49, %v1329_v8  ;;  %v643_v52 = vmul.f32 %v642_v50, %v1329_v8  ;;  %v629_v8 = vperm.slane %v1335_v26, 2 }
 0x5bb   : > { %v617_v53 = vadd.f32 1e-05, %v616_v51  ;;  %v644_v54 = vadd.f32 1e-05, %v643_v52 }
 0x5bd   : > { %967 = vrsqrt.f32 %v617_v53  ;;  %vm624_vm10 = vweird.f32 %v617_v53  ;;  %vm651_vm12 = vweird.f32 %v644_v54 }
 0x5be   : > { %969 = vrsqrt.f32 %v644_v54 }
 0x5c3   : > { %v968_v55 = vpop.eup %967 }
 0x5c4   : > { %v970_v56 = vpop.eup %969  ;;  %v619_v57 = vmul.f32 %v968_v55, %v617_v53  ;;  %vm625_vm8 = vweird.f32 %v968_v55 }
 0x5c5   : > { %v646_v58 = vmul.f32 %v970_v56, %v644_v54  ;;  %vm652_vm9 = vweird.f32 %v970_v56  ;;  %vm626_vm11 = vmor %vm624_vm10, %vm625_vm8 }
 0x5c6   : > { %v620_v59 = vmul.f32 %v968_v55, %v619_v57  ;;  %vm653_vm13 = vmor %vm651_vm12, %vm652_vm9 }
 0x5c7   : > { %v647_v60 = vmul.f32 %v970_v56, %v646_v58 }
 0x5c8   : > { %v621_v61 = vmul.f32 0.5, %v620_v59 }
 0x5c9   : > { %v648_v62 = vmul.f32 0.5, %v647_v60 }
 0x5ca   : > { %v622_v63 = vsub.f32 1.5, %v621_v61 }
 0x5cb   : > { %v649_v1 = vsub.f32 1.5, %v648_v62 }
 0x5cc   : > { %v623_v2 = vmul.f32 %v968_v55, %v622_v63 }
 0x5cd   : > { %v650_v3 = vmul.f32 %v970_v56, %v649_v1 }
 0x5ce   : > { %v627_v4 = vsel %vm626_vm11, %v968_v55, %v623_v2 }
 0x5cf   : > { %v628_v7 = vmul.f32 %v627_v4, %v611_v0  ;;  %v654_v9 = vsel %vm653_vm13, %v970_v56, %v650_v3 }
 0x5d0   : > { %v655_v11 = vmul.f32 %v654_v9, %v1393_v45 }
 0x5d1   : > { %v630_v12 = vmul.f32 %v629_v8, %v628_v7 }
 0x5d2   : > { %v657_v13 = vmul.f32 %v656_v5, %v655_v11 }
 0x5d3   : > { %v632_v14 = vadd.f32 %v631_v6, %v630_v12 }
 0x5d4   : > { %v659_v15 = vadd.f32 %v658_v10, %v657_v13 }
 0x5d6   : > { %v660_v16 = vadd.f32 %v659_v15, %v632_v14 }
 0x5d8   : > { %661 = vst.msk [vmem:[%s249_s7] sm:$0xff] %vm259_vm0, %v660_v16 }
 0x5d9   : > { %1116 = shalt.err (!%p1113_p3)
}
 0x5da   : > { %866 = dma.vmem_to_hbm [thread:$0]  (%p1280_p4), %s681_s9, 128, %s683_s10, %s663_s21  }
 0x5db PF: > { %s710_s14 = sand.u32 1, %s1151_s15   ;;  %p1473_p5 = scmp.ge.s32.totalorder %s1163_s18, 2 }
 0x5dc   : > { %s711_s23 = scalar_lea.sflag [#allocation4], %s710_s14 }
 0x5dd   : > { %p882_p12 = pnand %p1473_p5, %p1284_p6 }
 0x5df   : > { %p883_p7 = pneg %p882_p12 }
 0x5e1   : > { %1142 = dma.done.wait (%p883_p7), %s711_s23, 128  }
 0x5e2   : > { %1144 = vsyncadd (%p883_p7), %s711_s23, 4294967168  ;;  %s721_s30 = scalar_lea.sflag [#allocation10], %s710_s14 }
 0x5e3   : > { %1146 = dma.done.wait (%p883_p7), %s721_s30, 512  }
 0x5e4   : > { %1148 = vsyncadd (%p883_p7), %s721_s30, 4294966784  ;;  %p22_p4 = scmp.ge.s32.totalorder %s1254_s8, 4   ;;  %s1474_s15 = smov %s1155_s16 }
 0x5e5   : > { %s1475_s16 = smov %s1159_s17  ;;  %s1476_s17 = smov %s1265_s11 }
 0x5e6   : > { %s1477_s18 = smov %s1254_s8  ;;  %24 = sbr.rel (!%p22_p4) target bundleno = 8 (0x8), region = 105 }
 0x5eb   :  { %727 = vsyncpa [#allocation3], 1 }
 0x5ec   :  { %729 = vsyncpa [#allocation3 + $0x1], 1 }
 0x5ed   :  { %730 = vsyncpa [#allocation6], 1 }
 0x5ee   :  { %731 = vsyncpa [#allocation4], 1 }
 0x5ef   :  { %733 = vsyncpa [#allocation4 + $0x1], 1 }
 0x5f0   :  { %734 = vsyncpa [#allocation10], 1 }
 0x5f1   :  { %736 = vsyncpa [#allocation10 + $0x1], 1 }

</bundles_post_ra>
